<compile_context>
chip_gen: v6e
topology: v6e:2x2x1
jax: 0.10.0
libtpu: 0.0.40
codegen_flags: <defaults>
</compile_context>

<pallas_src>
import functools

import numpy as np

import jax
import jax.numpy as jnp
from jax.experimental import pallas as pl
from jax.experimental.pallas import tpu as pltpu


# ----------------------------- activation ------------------------------------

def _quick_gelu(x):
    return x * jax.nn.sigmoid(1.702 * x)


# ----------------------------- fused Pallas kernel ---------------------------

def _conv_pass_kernel(x_ref, wd_ref, bd_ref, wc_ref, bc_ref, wu_ref, bu_ref,
                      mask_ref, o_ref, *, t):
    """One (block_b*N, :) row slab per grid step.

    x_ref    : (M, 768)     bf16  input tokens, M = block_b * (f*t+1)
    wd_ref   : (768, dim)   bf16  spec_down weight
    bd_ref   : (1, dim)     f32   spec_down bias
    wc_ref   : (9*dim, dim) bf16  conv weight, rows ordered (kh, kw, Cin)
    bc_ref   : (1, dim)     f32   conv bias
    wu_ref   : (dim, 768)   bf16  spec_up weight
    bu_ref   : (1, 768)     f32   spec_up bias
    mask_ref : (M, 9*dim)   bf16  0/1 conv-tap validity mask (SAME padding;
                                  cls rows keep only the center tap)
    o_ref    : (M, 768)     f32   output
    """
    # ---- spec_down + QuickGELU (bf16 operands, f32 accumulation) ------------
    xd = jnp.dot(x_ref[...], wd_ref[...], preferred_element_type=jnp.float32)
    xd = _quick_gelu(xd + bd_ref[...])                            # (M, dim) f32

    # ---- im2col as a register value: 9 row-shifted copies + validity mask ---
    # Conv tap (di, dj) at patch position (i, j) reads the token shifted by
    # s = (di-1)*t + (dj-1) rows in row-major patch order; rows where the tap
    # falls outside the f x t grid, crosses a batch/cls boundary, or hits the
    # cls row for a non-center tap are zeroed by the precomputed mask.
    def shift_rows(v, s):
        if s == 0:
            return v
        z = jnp.zeros((abs(s), v.shape[1]), v.dtype)
        if s > 0:
            return jnp.concatenate([v[s:, :], z], axis=0)
        return jnp.concatenate([z, v[:s, :]], axis=0)

    taps = [shift_rows(xd, (di - 1) * t + (dj - 1)).astype(jnp.bfloat16)
            for di in range(3) for dj in range(3)]
    col = jnp.concatenate(taps, axis=-1) * mask_ref[...]         # (M, 9*dim)

    conv = jnp.dot(col, wc_ref[...],
                   preferred_element_type=jnp.float32) + bc_ref[...]   # (M, dim)

    # ---- QuickGELU, dropout(0.1) is identity in eval, spec_up ---------------
    y = _quick_gelu(conv).astype(jnp.bfloat16)
    o_ref[...] = (jnp.dot(y, wu_ref[...], preferred_element_type=jnp.float32)
                  + bu_ref[...]).astype(o_ref.dtype)


# ----------------------------- wrapper ----------------------------------------

def _build_tap_mask(f, t, dim, block_b):
    """(block_b*(f*t+1), 9*dim) 0/1 mask: SAME-padding validity per conv tap;
    the cls row keeps only the center tap (3x3 conv on a 1x1 map, pad=1)."""
    n = f * t + 1
    m = np.zeros((n, 9), np.float32)
    m[0, 4] = 1.0
    for p in range(f * t):
        i, j = divmod(p, t)
        for di in range(3):
            for dj in range(3):
                if 0 <= i + di - 1 < f and 0 <= j + dj - 1 < t:
                    m[1 + p, 3 * di + dj] = 1.0
    m = np.repeat(m, dim, axis=1)            # (n, 9*dim)
    return np.tile(m, (block_b, 1))          # (block_b*n, 9*dim)


def conv_pass_forward(x, params, f_dim, t_dim, *, block_b=None):
    """Fused conv_pass forward. x: (B, N, 768) with N = f_dim*t_dim + 1."""
    B, N, C = x.shape
    dim = params["down_w"].shape[1]
    assert N == f_dim * t_dim + 1

    # Batch blocking: each grid step handles block_b batch elements so the
    # matmul M dimension is block_b*N.  Legality: the (block_b*N, C) block
    # must equal the full (padded) extent (single grid step) or be 8-aligned.
    if block_b is None:
        if B <= 8:
            block_b = B          # one full-extent grid step
        elif B < 32:
            block_b = 8          # M = 136: fills v5e's 128-row MXU, >=2 steps
        else:
            block_b = 16         # M = 272: fills v6e/v7x's 256-row MXU
    grid_b = pl.cdiv(B, block_b)
    b_pad = grid_b * block_b
    assert grid_b == 1 or (block_b * N) % 8 == 0, "block_b*N must be 8-aligned"
    M = block_b * N

    # bf16 input / weights for MXU-native streaming; biases & output stay f32.
    xb = x.astype(jnp.bfloat16)
    if b_pad != B:
        xb = jnp.concatenate(
            [xb, jnp.zeros((b_pad - B, N, C), jnp.bfloat16)], axis=0)
    x2 = xb.reshape(b_pad * N, C)

    wd = params["down_w"].astype(jnp.bfloat16)                        # (768, dim)
    wc = params["conv_w"].reshape(9 * dim, dim).astype(jnp.bfloat16)  # (9*dim, dim)
    wu = params["up_w"].astype(jnp.bfloat16)                          # (dim, 768)
    bd = params["down_b"].reshape(1, dim).astype(jnp.float32)
    bc = params["conv_b"].reshape(1, dim).astype(jnp.float32)
    bu = params["up_b"].reshape(1, C).astype(jnp.float32)
    mask = jnp.asarray(_build_tap_mask(f_dim, t_dim, dim, block_b),
                       dtype=jnp.bfloat16)                            # (M, 9*dim)

    flops = 2 * b_pad * N * dim * (2 * C + 9 * dim)
    transcendentals = 2 * b_pad * N * dim
    bytes_accessed = (b_pad * N * C * (2 + 4)
                      + 2 * (C * dim + 9 * dim * dim + dim * C + M * 9 * dim)
                      + 4 * (2 * dim + C))

    kernel = functools.partial(_conv_pass_kernel, t=t_dim)
    out = pl.pallas_call(
        kernel,
        out_shape=jax.ShapeDtypeStruct((b_pad * N, C), x.dtype),
        grid=(grid_b,),
        in_specs=[
            pl.BlockSpec((M, C), lambda b: (b, 0)),            # x row slab
            pl.BlockSpec((C, dim), lambda b: (0, 0)),          # spec_down w
            pl.BlockSpec((1, dim), lambda b: (0, 0)),          # spec_down b
            pl.BlockSpec((9 * dim, dim), lambda b: (0, 0)),    # conv w (im2col)
            pl.BlockSpec((1, dim), lambda b: (0, 0)),          # conv b
            pl.BlockSpec((dim, C), lambda b: (0, 0)),          # spec_up w
            pl.BlockSpec((1, C), lambda b: (0, 0)),            # spec_up b
            pl.BlockSpec((M, 9 * dim), lambda b: (0, 0)),      # tap mask
        ],
        out_specs=pl.BlockSpec((M, C), lambda b: (b, 0)),
        compiler_params=pltpu.CompilerParams(
            dimension_semantics=("parallel",)),                # v7x: 2 TCs
        cost_estimate=pl.CostEstimate(
            flops=int(flops), transcendentals=int(transcendentals),
            bytes_accessed=int(bytes_accessed)),
    )(x2, wd, bd, wc, bc, wu, bu, mask)

    out = out.reshape(b_pad, N, C)
    return out[:B] if b_pad != B else out


# ----------------------------- pure-JAX reference ----------------------------

def _conv_pass_reference(x, params, f_dim, t_dim):
    """f32 reference mirroring the PyTorch module (eval mode)."""
    B, N, C = x.shape
    dim = params["down_w"].shape[1]
    xd = _quick_gelu(x @ params["down_w"] + params["down_b"])
    x_patch = xd[:, 1:, :].reshape(B, f_dim, t_dim, dim)
    y_patch = jax.lax.conv_general_dilated(
        x_patch, params["conv_w"], window_strides=(1, 1), padding="SAME",
        dimension_numbers=("NHWC", "HWIO", "NHWC")) + params["conv_b"]
    y_cls = xd[:, :1, :] @ params["conv_w"][1, 1] + params["conv_b"]
    y = jnp.concatenate([y_cls, y_patch.reshape(B, f_dim * t_dim, dim)], axis=1)
    y = _quick_gelu(y)              # dropout(0.1) is identity in eval mode
    return y @ params["up_w"] + params["up_b"]


# ----------------------------- params ----------------------------------------

def init_params(key, C, dim):
    # NOTE: the PyTorch module zero-inits spec_up; small random values are used
    # here so the kernel output is non-trivial (parity tests vs. that init
    # would need zeros). conv_w is stored HWIO (kh, kw, Cin, Cout), i.e. the
    # torch weight (Cout, Cin, kh, kw).transpose(2, 3, 1, 0).
    ks = jax.random.split(key, 6)

    def w(k, shape, scale=0.02):
        return (scale * jax.random.normal(k, shape)).astype(jnp.float32)

    return {
        "down_w": w(ks[0], (C, dim)),
        "down_b": w(ks[1], (dim,)),
        "conv_w": w(ks[2], (3, 3, dim, dim)),
        "conv_b": w(ks[3], (dim,)),
        "up_w": w(ks[4], (dim, C)),
        "up_b": w(ks[5], (C,)),
    }


# ----------------------------- main -------------------------------------------

if __name__ == "__main__":
    C = 768                  # hard-wired by spec_down = nn.Linear(768, dim)
    dim = 16                 # conv_pass bottleneck dim
    f_dim, t_dim = 4, 4      # patch grid; N = f*t + 1 (cls token)
    N = f_dim * t_dim + 1

    key = jax.random.PRNGKey(0)
    kx, kp = jax.random.split(key)
    params = init_params(kp, C, dim)

    fwd = jax.jit(conv_pass_forward, static_argnums=(2, 3))

    # Small batch: single full-extent grid step.
    B = 2
    x = jax.random.normal(kx, (B, N, C), jnp.float32)
    out = jax.block_until_ready(fwd(x, params, f_dim, t_dim))
    assert out.shape == (B, N, C) and out.dtype == jnp.float32
    ref = jax.block_until_ready(_conv_pass_reference(x, params, f_dim, t_dim))
    err = float(jnp.max(jnp.abs(out - ref)))
    # loose tolerance: kernel uses bf16 matmul operands (f32 accumulation)
    assert err < 5e-2, f"max abs err {err}"

    # Ragged batch: block_b=8, B padded 9->16, grid=(2,) (multi-step path).
    B2 = 9
    x2 = jax.random.normal(jax.random.PRNGKey(1), (B2, N, C), jnp.float32)
    out2 = jax.block_until_ready(fwd(x2, params, f_dim, t_dim))
    assert out2.shape == (B2, N, C) and out2.dtype == jnp.float32
    ref2 = jax.block_until_ready(_conv_pass_reference(x2, params, f_dim, t_dim))
    err2 = float(jnp.max(jnp.abs(out2 - ref2)))
    assert err2 < 5e-2, f"max abs err {err2}"

    print("KERNEL_OK")
</pallas_src>

<mosaic_0001>
module attributes {stable_mosaic.version = 11 : i64} {
  func.func @_conv_pass_kernel(%arg0: i32, %arg1: memref<34x768xbf16, #tpu.memory_space<vmem>>, %arg2: memref<768x16xbf16, #tpu.memory_space<vmem>>, %arg3: memref<1x16xf32, #tpu.memory_space<vmem>>, %arg4: memref<144x16xbf16, #tpu.memory_space<vmem>>, %arg5: memref<1x16xf32, #tpu.memory_space<vmem>>, %arg6: memref<16x768xbf16, #tpu.memory_space<vmem>>, %arg7: memref<1x768xf32, #tpu.memory_space<vmem>>, %arg8: memref<34x144xbf16, #tpu.memory_space<vmem>>, %arg9: memref<34x768xf32, #tpu.memory_space<vmem>>) attributes {dimension_semantics = [#tpu.dimension_semantics<parallel>], iteration_bounds = array<i64: 1>, scalar_prefetch = 0 : i64, scratch_operands = 0 : i64, tpu.core_type = #tpu.core_type<tc>, window_params = [{transform_indices = @transform_0, window_bounds = array<i64: 34, 768>}, {pipeline_mode = #tpu.pipeline_mode<synchronous>, transform_indices = @transform_1, window_bounds = array<i64: 768, 16>}, {pipeline_mode = #tpu.pipeline_mode<synchronous>, transform_indices = @transform_2, window_bounds = array<i64: 1, 16>}, {pipeline_mode = #tpu.pipeline_mode<synchronous>, transform_indices = @transform_3, window_bounds = array<i64: 144, 16>}, {pipeline_mode = #tpu.pipeline_mode<synchronous>, transform_indices = @transform_4, window_bounds = array<i64: 1, 16>}, {pipeline_mode = #tpu.pipeline_mode<synchronous>, transform_indices = @transform_5, window_bounds = array<i64: 16, 768>}, {pipeline_mode = #tpu.pipeline_mode<synchronous>, transform_indices = @transform_6, window_bounds = array<i64: 1, 768>}, {pipeline_mode = #tpu.pipeline_mode<synchronous>, transform_indices = @transform_7, window_bounds = array<i64: 34, 144>}, {transform_indices = @transform_8, window_bounds = array<i64: 34, 768>}]} {
    %c0 = arith.constant 0 : index
    %c0_0 = arith.constant 0 : index
    %0 = vector.load %arg1[%c0, %c0_0] : memref<34x768xbf16, #tpu.memory_space<vmem>>, vector<34x768xbf16>
    %c0_1 = arith.constant 0 : index
    %c0_2 = arith.constant 0 : index
    %1 = vector.load %arg2[%c0_1, %c0_2] : memref<768x16xbf16, #tpu.memory_space<vmem>>, vector<768x16xbf16>
    %cst = arith.constant dense<0.000000e+00> : vector<34x16xf32>
    %2 = tpu.matmul %0, %1, %cst {dimension_numbers = #tpu.dot_dimension_numbers<[1], [0], [0], [1], [0, 0, 1, 1], [], []>} : vector<34x768xbf16>, vector<768x16xbf16>, vector<34x16xf32> -> vector<34x16xf32>
    %c0_3 = arith.constant 0 : index
    %c0_4 = arith.constant 0 : index
    %3 = vector.load %arg3[%c0_3, %c0_4] : memref<1x16xf32, #tpu.memory_space<vmem>>, vector<1x16xf32>
    %4 = vector.broadcast %3 : vector<1x16xf32> to vector<34x16xf32>
    %5 = arith.addf %2, %4 : vector<34x16xf32>
    %cst_5 = arith.constant 1.702000e+00 : f32
    %6 = vector.broadcast %cst_5 : f32 to vector<34x16xf32>
    %7 = arith.mulf %6, %5 : vector<34x16xf32>
    %8 = arith.negf %7 : vector<34x16xf32>
    %9 = math.exp %8 : vector<34x16xf32>
    %cst_6 = arith.constant 1.000000e+00 : f32
    %10 = vector.broadcast %cst_6 : f32 to vector<34x16xf32>
    %11 = arith.addf %10, %9 : vector<34x16xf32>
    %12 = arith.divf %10, %11 : vector<34x16xf32>
    %13 = arith.mulf %5, %12 : vector<34x16xf32>
    %cst_7 = arith.constant 0.000000e+00 : f32
    %14 = vector.broadcast %cst_7 : f32 to vector<5x16xf32>
    %15 = vector.extract_strided_slice %13 {offsets = [0, 0], sizes = [29, 16], strides = [1, 1]} : vector<34x16xf32> to vector<29x16xf32>
    %16 = tpu.concatenate %14, %15 in 0 : vector<5x16xf32>, vector<29x16xf32> -> vector<34x16xf32>
    %17 = arith.truncf %16 : vector<34x16xf32> to vector<34x16xbf16>
    %cst_8 = arith.constant 0.000000e+00 : f32
    %18 = vector.broadcast %cst_8 : f32 to vector<4x16xf32>
    %19 = vector.extract_strided_slice %13 {offsets = [0, 0], sizes = [30, 16], strides = [1, 1]} : vector<34x16xf32> to vector<30x16xf32>
    %20 = tpu.concatenate %18, %19 in 0 : vector<4x16xf32>, vector<30x16xf32> -> vector<34x16xf32>
    %21 = arith.truncf %20 : vector<34x16xf32> to vector<34x16xbf16>
    %cst_9 = arith.constant 0.000000e+00 : f32
    %22 = vector.broadcast %cst_9 : f32 to vector<3x16xf32>
    %23 = vector.extract_strided_slice %13 {offsets = [0, 0], sizes = [31, 16], strides = [1, 1]} : vector<34x16xf32> to vector<31x16xf32>
    %24 = tpu.concatenate %22, %23 in 0 : vector<3x16xf32>, vector<31x16xf32> -> vector<34x16xf32>
    %25 = arith.truncf %24 : vector<34x16xf32> to vector<34x16xbf16>
    %cst_10 = arith.constant 0.000000e+00 : f32
    %26 = vector.broadcast %cst_10 : f32 to vector<1x16xf32>
    %27 = vector.extract_strided_slice %13 {offsets = [0, 0], sizes = [33, 16], strides = [1, 1]} : vector<34x16xf32> to vector<33x16xf32>
    %28 = tpu.concatenate %26, %27 in 0 : vector<1x16xf32>, vector<33x16xf32> -> vector<34x16xf32>
    %29 = arith.truncf %28 : vector<34x16xf32> to vector<34x16xbf16>
    %30 = arith.truncf %13 : vector<34x16xf32> to vector<34x16xbf16>
    %cst_11 = arith.constant 0.000000e+00 : f32
    %31 = vector.broadcast %cst_11 : f32 to vector<1x16xf32>
    %32 = vector.extract_strided_slice %13 {offsets = [1, 0], sizes = [33, 16], strides = [1, 1]} : vector<34x16xf32> to vector<33x16xf32>
    %33 = tpu.concatenate %32, %31 in 0 : vector<33x16xf32>, vector<1x16xf32> -> vector<34x16xf32>
    %34 = arith.truncf %33 : vector<34x16xf32> to vector<34x16xbf16>
    %cst_12 = arith.constant 0.000000e+00 : f32
    %35 = vector.broadcast %cst_12 : f32 to vector<3x16xf32>
    %36 = vector.extract_strided_slice %13 {offsets = [3, 0], sizes = [31, 16], strides = [1, 1]} : vector<34x16xf32> to vector<31x16xf32>
    %37 = tpu.concatenate %36, %35 in 0 : vector<31x16xf32>, vector<3x16xf32> -> vector<34x16xf32>
    %38 = arith.truncf %37 : vector<34x16xf32> to vector<34x16xbf16>
    %cst_13 = arith.constant 0.000000e+00 : f32
    %39 = vector.broadcast %cst_13 : f32 to vector<4x16xf32>
    %40 = vector.extract_strided_slice %13 {offsets = [4, 0], sizes = [30, 16], strides = [1, 1]} : vector<34x16xf32> to vector<30x16xf32>
    %41 = tpu.concatenate %40, %39 in 0 : vector<30x16xf32>, vector<4x16xf32> -> vector<34x16xf32>
    %42 = arith.truncf %41 : vector<34x16xf32> to vector<34x16xbf16>
    %cst_14 = arith.constant 0.000000e+00 : f32
    %43 = vector.broadcast %cst_14 : f32 to vector<5x16xf32>
    %44 = vector.extract_strided_slice %13 {offsets = [5, 0], sizes = [29, 16], strides = [1, 1]} : vector<34x16xf32> to vector<29x16xf32>
    %45 = tpu.concatenate %44, %43 in 0 : vector<29x16xf32>, vector<5x16xf32> -> vector<34x16xf32>
    %46 = arith.truncf %45 : vector<34x16xf32> to vector<34x16xbf16>
    %47 = tpu.concatenate %17, %21, %25, %29, %30, %34, %38, %42, %46 in 1 : vector<34x16xbf16>, vector<34x16xbf16>, vector<34x16xbf16>, vector<34x16xbf16>, vector<34x16xbf16>, vector<34x16xbf16>, vector<34x16xbf16>, vector<34x16xbf16>, vector<34x16xbf16> -> vector<34x144xbf16>
    %c0_15 = arith.constant 0 : index
    %c0_16 = arith.constant 0 : index
    %48 = vector.load %arg8[%c0_15, %c0_16] : memref<34x144xbf16, #tpu.memory_space<vmem>>, vector<34x144xbf16>
    %49 = arith.mulf %47, %48 : vector<34x144xbf16>
    %c0_17 = arith.constant 0 : index
    %c0_18 = arith.constant 0 : index
    %50 = vector.load %arg4[%c0_17, %c0_18] : memref<144x16xbf16, #tpu.memory_space<vmem>>, vector<144x16xbf16>
    %cst_19 = arith.constant dense<0.000000e+00> : vector<34x16xf32>
    %51 = tpu.matmul %49, %50, %cst_19 {dimension_numbers = #tpu.dot_dimension_numbers<[1], [0], [0], [1], [0, 0, 1, 1], [], []>} : vector<34x144xbf16>, vector<144x16xbf16>, vector<34x16xf32> -> vector<34x16xf32>
    %c0_20 = arith.constant 0 : index
    %c0_21 = arith.constant 0 : index
    %52 = vector.load %arg5[%c0_20, %c0_21] : memref<1x16xf32, #tpu.memory_space<vmem>>, vector<1x16xf32>
    %53 = vector.broadcast %52 : vector<1x16xf32> to vector<34x16xf32>
    %54 = arith.addf %51, %53 : vector<34x16xf32>
    %cst_22 = arith.constant 1.702000e+00 : f32
    %55 = vector.broadcast %cst_22 : f32 to vector<34x16xf32>
    %56 = arith.mulf %55, %54 : vector<34x16xf32>
    %57 = arith.negf %56 : vector<34x16xf32>
    %58 = math.exp %57 : vector<34x16xf32>
    %cst_23 = arith.constant 1.000000e+00 : f32
    %59 = vector.broadcast %cst_23 : f32 to vector<34x16xf32>
    %60 = arith.addf %59, %58 : vector<34x16xf32>
    %61 = arith.divf %59, %60 : vector<34x16xf32>
    %62 = arith.mulf %54, %61 : vector<34x16xf32>
    %63 = arith.truncf %62 : vector<34x16xf32> to vector<34x16xbf16>
    %c0_24 = arith.constant 0 : index
    %c0_25 = arith.constant 0 : index
    %64 = vector.load %arg6[%c0_24, %c0_25] : memref<16x768xbf16, #tpu.memory_space<vmem>>, vector<16x768xbf16>
    %cst_26 = arith.constant dense<0.000000e+00> : vector<34x768xf32>
    %65 = tpu.matmul %63, %64, %cst_26 {dimension_numbers = #tpu.dot_dimension_numbers<[1], [0], [0], [1], [0, 0, 1, 1], [], []>} : vector<34x16xbf16>, vector<16x768xbf16>, vector<34x768xf32> -> vector<34x768xf32>
    %c0_27 = arith.constant 0 : index
    %c0_28 = arith.constant 0 : index
    %66 = vector.load %arg7[%c0_27, %c0_28] : memref<1x768xf32, #tpu.memory_space<vmem>>, vector<1x768xf32>
    %67 = vector.broadcast %66 : vector<1x768xf32> to vector<34x768xf32>
    %68 = arith.addf %65, %67 : vector<34x768xf32>
    %c0_29 = arith.constant 0 : index
    %c0_30 = arith.constant 0 : index
    %69 = vector.load %arg9[%c0_29, %c0_30] : memref<34x768xf32, #tpu.memory_space<vmem>>, vector<34x768xf32>
    tpu.vector_store %arg9[%c0_29, %c0_30], %68 {strides = array<i32>} : memref<34x768xf32, #tpu.memory_space<vmem>>, vector<34x768xf32>,
    return
  }
  func.func @transform_0(%arg0: i32) -> (i32, i32) {
    %c0_i32 = arith.constant 0 : i32
    %c0_i32_0 = arith.constant 0 : i32
    return %arg0, %c0_i32 : i32, i32
  }
  func.func @transform_1(%arg0: i32) -> (i32, i32) {
    %c0_i32 = arith.constant 0 : i32
    %c0_i32_0 = arith.constant 0 : i32
    %c0_i32_1 = arith.constant 0 : i32
    return %c0_i32, %c0_i32_0 : i32, i32
  }
  func.func @transform_2(%arg0: i32) -> (i32, i32) {
    %c0_i32 = arith.constant 0 : i32
    %c0_i32_0 = arith.constant 0 : i32
    %c0_i32_1 = arith.constant 0 : i32
    return %c0_i32, %c0_i32_0 : i32, i32
  }
  func.func @transform_3(%arg0: i32) -> (i32, i32) {
    %c0_i32 = arith.constant 0 : i32
    %c0_i32_0 = arith.constant 0 : i32
    %c0_i32_1 = arith.constant 0 : i32
    return %c0_i32, %c0_i32_0 : i32, i32
  }
  func.func @transform_4(%arg0: i32) -> (i32, i32) {
    %c0_i32 = arith.constant 0 : i32
    %c0_i32_0 = arith.constant 0 : i32
    %c0_i32_1 = arith.constant 0 : i32
    return %c0_i32, %c0_i32_0 : i32, i32
  }
  func.func @transform_5(%arg0: i32) -> (i32, i32) {
    %c0_i32 = arith.constant 0 : i32
    %c0_i32_0 = arith.constant 0 : i32
    %c0_i32_1 = arith.constant 0 : i32
    return %c0_i32, %c0_i32_0 : i32, i32
  }
  func.func @transform_6(%arg0: i32) -> (i32, i32) {
    %c0_i32 = arith.constant 0 : i32
    %c0_i32_0 = arith.constant 0 : i32
    %c0_i32_1 = arith.constant 0 : i32
    return %c0_i32, %c0_i32_0 : i32, i32
  }
  func.func @transform_7(%arg0: i32) -> (i32, i32) {
    %c0_i32 = arith.constant 0 : i32
    %c0_i32_0 = arith.constant 0 : i32
    %c0_i32_1 = arith.constant 0 : i32
    return %c0_i32, %c0_i32_0 : i32, i32
  }
  func.func @transform_8(%arg0: i32) -> (i32, i32) {
    %c0_i32 = arith.constant 0 : i32
    %c0_i32_0 = arith.constant 0 : i32
    return %arg0, %c0_i32 : i32, i32
  }
}

</mosaic_0001>

<bundles_post_ra>
// kernel: conv_pass_forward.1
= control target key start
LH: loop header
LB: loop body
LE: loop exit
PB: predicated region body
PF: predicated region fallthrough
CT: control target
= control target key end

     0   :  { %vm729_vm0 = vcmask 1044480   ;;  %vm746_vm1 = vcmask 1043456   ;;  %vm781_vm2 = vcmask 1040384   ;;  %vm763_vm3 = vcmask 1042432   ;;  %s1841_s14 = smov 64   ;;  %s1842_s15 = smov 16   ;;  %s2438_s1 = inlined_call_operand.vmem [shape: bf16[768,16], index: 1, kind: input, shape index: {}]   ;;  %s2439_s0 = inlined_call_operand.vmem [shape: bf16[34,768], index: 0, kind: input, shape index: {}]   ;;  %s2440_s7 = inlined_call_operand.vmem [shape: bf16[34,144], index: 7, kind: input, shape index: {}]   ;;  %s2441_s3 = inlined_call_operand.vmem [shape: bf16[144,16], index: 3, kind: input, shape index: {}]   ;;  %s2442_s2 = inlined_call_operand.vmem [shape: f32[1,16], index: 2, kind: input, shape index: {}]   ;;  %s2443_s5 = inlined_call_operand.vmem [shape: bf16[16,768], index: 5, kind: input, shape index: {}]   ;;  %s2444_s4 = inlined_call_operand.vmem [shape: f32[1,16], index: 4, kind: input, shape index: {}]   ;;  %s2445_s6 = inlined_call_operand.vmem [shape: f32[1,768], index: 6, kind: input, shape index: {}]   ;;  %s2446_s8 = inlined_call_operand.vmem [shape: f32[34,768], index: 8, kind: output, shape index: {}]  }
   0x1   :  { %v1702_v0 = vld [vmem:[%s2438_s1 + $0x78] sm:$0xff]   ;;  %v1706_v4 = vld [vmem:[%s2438_s1 + $0x70] sm:$0xff]   ;;  %v1710_v8 = vld [vmem:[%s2438_s1 + $0x68] sm:$0xff]   ;;  %vm803_vm4 = vcmask 1046528   ;;  %s1843_s20 = smov 48   ;;  %vm904_vm5 = vcmask 130048  }
   0x2   :  { %v1703_v1 = vld [vmem:[%s2438_s1 + $0x38] sm:$0xff]   ;;  %1589 = vmatprep.subr.bf16.mxu0 %v1702_v0  ;;  %v1707_v5 = vld [vmem:[%s2438_s1 + $0x30] sm:$0xff]   ;;  %v1711_v9 = vld [vmem:[%s2438_s1 + $0x28] sm:$0xff]   ;;  %s1846_s21 = smov 80   ;;  %s1847_s22 = smov 112   ;;  %vm832_vm6 = vcmask 1045504  }
   0x3   :  { %v1704_v2 = vld [vmem:[%s2438_s1 + $0xf8] sm:$0xff]   ;;  %1590 = vmatpush3.bf16.msra.mxu0 %v1703_v1  ;;  %v1708_v6 = vld [vmem:[%s2438_s1 + $0xf0] sm:$0xff]   ;;  %v1712_v10 = vld [vmem:[%s2438_s1 + $0xe8] sm:$0xff]   ;;  %vm914_vm7 = vcmask 261120   ;;  %vm921_vm8 = vcmask 392192   ;;  %vm928_vm9 = vcmask 523264  }
   0x4   :  { %v1705_v3 = vld [vmem:[%s2438_s1 + $0xb8] sm:$0xff]   ;;  %1623 = vmatprep.subr.bf16.mxu1 %v1704_v2  ;;  %1591 = vmatprep.subr.bf16.mxu0 %v1706_v4  ;;  %v1709_v7 = vld [vmem:[%s2438_s1 + $0xb0] sm:$0xff]   ;;  %v1713_v11 = vld [vmem:[%s2438_s1 + $0xa8] sm:$0xff]   ;;  %vm935_vm10 = vcmask 654336   ;;  %vm942_vm11 = vcmask 785408   ;;  %vm949_vm12 = vcmask 916480  }
   0x5   :  { %1624 = vmatpush3.bf16.msra.mxu1 %v1705_v3  ;;  %v1714_v12 = vld [vmem:[%s2438_s1 + $0x60] sm:$0xff]   ;;  %v1718_v16 = vld [vmem:[%s2438_s1 + $0x58] sm:$0xff]   ;;  %v1722_v20 = vld [vmem:[%s2438_s1 + $0x50] sm:$0xff]  }
   0x6   :  { %1625 = vmatprep.subr.bf16.mxu1 %v1708_v6  ;;  %v1715_v13 = vld [vmem:[%s2438_s1 + $0x20] sm:$0xff]   ;;  %v1719_v17 = vld [vmem:[%s2438_s1 + $0x18] sm:$0xff]   ;;  %v1723_v21 = vld [vmem:[%s2438_s1 + $0x10] sm:$0xff]  }
   0x7   :  { %1592 = vmatpush3.bf16.msra.mxu0 %v1707_v5  ;;  %v1716_v14 = vld [vmem:[%s2438_s1 + $0xe0] sm:$0xff]   ;;  %v1720_v18 = vld [vmem:[%s2438_s1 + $0xd8] sm:$0xff]   ;;  %v1724_v22 = vld [vmem:[%s2438_s1 + $0xd0] sm:$0xff]   ;;  %v1840_v5 = vmov 0  }
   0x8   :  { %1593 = vmatprep.subr.bf16.mxu0 %v1710_v8  ;;  %v1717_v15 = vld [vmem:[%s2438_s1 + $0xa0] sm:$0xff]   ;;  %v1721_v19 = vld [vmem:[%s2438_s1 + $0x98] sm:$0xff]   ;;  %v1725_v23 = vld [vmem:[%s2438_s1 + $0x90] sm:$0xff]  }
   0x9   :  { %1626 = vmatpush3.bf16.msra.mxu1 %v1709_v7  ;;  %v1726_v24 = vld [vmem:[%s2438_s1 + $0x48] sm:$0xff]   ;;  %v1730_v28 = vld [vmem:[%s2438_s1 + $0x40] sm:$0xff]   ;;  %v1737_v34 = vld [vmem:[%s2438_s1 + $0x178] sm:$0xff]  }
   0xa   :  { %1627 = vmatprep.subr.bf16.mxu1 %v1712_v10  ;;  %v1727_v25 = vld [vmem:[%s2438_s1 + $0x8] sm:$0xff]   ;;  %v1731_v29 = vld [vmem:[%s2438_s1] sm:$0xff]   ;;  %v1741_v37 = vld [vmem:[%s2438_s1 + $0x138] sm:$0xff]  }
   0xb   :  { %1594 = vmatpush3.bf16.msra.mxu0 %v1711_v9  ;;  %v1728_v26 = vld [vmem:[%s2438_s1 + $0xc8] sm:$0xff]   ;;  %v1732_v30 = vld [vmem:[%s2438_s1 + $0xc0] sm:$0xff]   ;;  %v1742_v38 = vld [vmem:[%s2438_s1 + $0x170] sm:$0xff]  }
   0xc   :  { %1595 = vmatprep.subr.bf16.mxu0 %v1714_v12  ;;  %v1729_v27 = vld [vmem:[%s2438_s1 + $0x88] sm:$0xff]   ;;  %v1733_v31 = vld [vmem:[%s2439_s0] ss:$24 sps:$4 sm:$0xff]   ;;  %v1735_v32 = vld [vmem:[%s2439_s0 + $0x4] ss:$24 sps:$4 sm:$0xff]  }
   0xd   :  { %1628 = vmatpush3.bf16.msra.mxu1 %v1713_v11  ;;  %v1736_v33 = vld [vmem:[%s2438_s1 + $0x80] sm:$0xff]   ;;  %549 = vmatprep.mubr.bf16.mxu0 %v1735_v32  ;;  %v1743_v39 = vld [vmem:[%s2438_s1 + $0x130] sm:$0xff]   ;;  %v1744_v40 = vld [vmem:[%s2438_s1 + $0x168] sm:$0xff]  }
   0xe   :  { %1629 = vmatprep.subr.bf16.mxu1 %v1716_v14  ;;  %v1738_v35 = vld [vmem:[%s2439_s0 + $0x8] ss:$24 sps:$4 sm:$0xff]   ;;  %v1740_v36 = vld [vmem:[%s2439_s0 + $0xc] ss:$24 sps:$4 sm:$0xff]   ;;  %v1749_v44 = vld [vmem:[%s2439_s0 + $0x3c] ss:$24 sps:$4 sm:$0xff]  }
   0xf   :  { %1596 = vmatpush3.bf16.msra.mxu0 %v1715_v13  ;;  %605 = vmatprep.mubr.bf16.mxu1 %v1740_v36  ;;  %v1745_v41 = vld [vmem:[%s2439_s0 + $0x34] ss:$24 sps:$4 sm:$0xff]   ;;  %v1748_v43 = vld [vmem:[%s2439_s0 + $0x30] ss:$24 sps:$4 sm:$0xff]   ;;  %v1752_v46 = vld [vmem:[%s2438_s1 + $0x160] sm:$0xff]  }
  0x10   :  { %1597 = vmatprep.subr.bf16.mxu0 %v1718_v16  ;;  %v1747_v42 = vld [vmem:[%s2438_s1 + $0x128] sm:$0xff]   ;;  %v1751_v45 = vld [vmem:[%s2439_s0 + $0x38] ss:$24 sps:$4 sm:$0xff]   ;;  %v1753_v47 = vld [vmem:[%s2438_s1 + $0x120] sm:$0xff]  }
  0x11   :  { %1630 = vmatpush3.bf16.msra.mxu1 %v1717_v15  ;;  %v42_v48 = vld [vmem:[%s2439_s0 + $0x60] sm:$0x11]  ;;  %v1754_v49 = vld [vmem:[%s2438_s1 + $0x158] sm:$0xff]   ;;  %v43_v52 = vld [vmem:[%s2439_s0 + $0x68] sm:$0x11] }
  0x12   :  { %1631 = vmatprep.subr.bf16.mxu1 %v1720_v18  ;;  %v1492_v50 = vcombine.high %v42_v48, %v42_v48  ;;  %v1491_v51 = vcombine.low %v42_v48, %v42_v48  ;;  %v1756_v53 = vld [vmem:[%s2438_s1 + $0x118] sm:$0xff]   ;;  %v1494_v54 = vcombine.high %v43_v52, %v43_v52  ;;  %v1493_v55 = vcombine.low %v43_v52, %v43_v52  ;;  %v1758_v56 = vld [vmem:[%s2438_s1 + $0x150] sm:$0xff]   ;;  %v1762_v58 = vld [vmem:[%s2438_s1 + $0x148] sm:$0xff]  }
  0x13   :  { %1598 = vmatpush3.bf16.msra.mxu0 %v1719_v17  ;;  %v1759_v57 = vld [vmem:[%s2438_s1 + $0x110] sm:$0xff]   ;;  %v1763_v60 = vld [vmem:[%s2438_s1 + $0x108] sm:$0xff]   ;;  %v1764_v61 = vld [vmem:[%s2438_s1 + $0x140] sm:$0xff]  }
  0x14   :  { %1599 = vmatprep.subr.bf16.mxu0 %v1722_v20  ;;  %v1768_v59 = vld [vmem:[%s2439_s0 + $0x14] ss:$24 sps:$4 sm:$0xff]   ;;  %v1765_v62 = vld [vmem:[%s2438_s1 + $0x100] sm:$0xff]   ;;  %v1766_v63 = vld [vmem:[%s2439_s0 + $0x10] ss:$24 sps:$4 sm:$0xff]   ;;  %s1845_s1 = smov 96  }
  0x15   :  { %1632 = vmatpush3.bf16.msra.mxu1 %v1721_v19  ;;  %v1769_v0 = vld [vmem:[%s2439_s0 + $0x44] ss:$24 sps:$4 sm:$0xff]   ;;  %v44_v1 = vld [vmem:[%s2439_s0 + $0x70] sm:$0x11]  ;;  %v1771_v2 = vld [vmem:[%s2439_s0 + $0x40] ss:$24 sps:$4 sm:$0xff]  }
  0x16   :  { %1633 = vmatprep.subr.bf16.mxu1 %v1724_v22  ;;  %v1496_v3 = vcombine.high %v44_v1, %v44_v1  ;;  %v1495_v4 = vcombine.low %v44_v1, %v44_v1  ;;  %v1776_v6 = vld [vmem:[%s2441_s3 + $0x38] sm:$0xff]   ;;  %v1777_v8 = vld [vmem:[%s2441_s3 + $0x30] sm:$0xff]   ;;  %v1778_v11 = vld [vmem:[%s2441_s3 + $0x28] sm:$0xff]  }
  0x17   :  { %1600 = vmatpush3.bf16.msra.mxu0 %v1723_v21  ;;  %v1779_v18 = vld [vmem:[%s2441_s3 + $0x20] sm:$0xff]  }
  0x18   :  { %1601 = vmatprep.subr.bf16.mxu0 %v1726_v24  ;;  %v1478_v36 = vld [vmem:[%s2442_s2] ss:$0 sm:$0xff] }
  0x19   :  { %1634 = vmatpush3.bf16.msra.mxu1 %v1725_v23  ;;  %v1780_v23 = vld [vmem:[%s2441_s3 + $0x18] sm:$0xff]  }
  0x1a   :  { %1635 = vmatprep.subr.bf16.mxu1 %v1728_v26 }
  0x1b   :  { %1602 = vmatpush3.bf16.msra.mxu0 %v1727_v25 }
  0x1c   :  { %1603 = vmatprep.subr.bf16.mxu0 %v1730_v28 }
  0x1d   :  { %1636 = vmatpush3.bf16.msra.mxu1 %v1729_v27 }
  0x1e   :  { %1637 = vmatprep.subr.bf16.mxu1 %v1732_v30 }
  0x1f   :  { %1604 = vmatpush3.bf16.msra.mxu0 %v1731_v29 }
  0x20   :  { %1657 = vmatprep.subr.bf16.mxu0 %v1737_v34 }
  0x21   :  { %1638 = vmatpush3.bf16.msra.mxu1 %v1736_v33 }
  0x22   :  { %550 = vmatmul.mubr.bf16.vlgmr.msra.gmra.mxu0 %v1733_v31  ;;  %1085 = vmatprep.subr.bf16.mxu1 %v1840_v5 }
  0x23   :  { %1658 = vmatpush3.bf16.msra.mxu0 %v1741_v37  ;;  %557 = vmatprep.mubr.bf16.mxu0 %v1745_v41 }
  0x24   :  { %606 = vmatmul.mubr.bf16.vlgmr.msra.gmra.mxu1 %v1738_v35  ;;  %1659 = vmatprep.subr.bf16.mxu0 %v1742_v38 }
  0x25   :  { %613 = vmatprep.mubr.bf16.mxu1 %v1749_v44  ;;  %1086 = vmatpush1.bf16.msra.mxu1 %v1776_v6 }
  0x26   :  { %1087 = vmatprep.subr.bf16.mxu1 %v1840_v5 }
  0x27   :  { %1660 = vmatpush3.bf16.msra.mxu0 %v1743_v39 }
  0x28   :  { %1661 = vmatprep.subr.bf16.mxu0 %v1744_v40 }
  0x29   :  { %1088 = vmatpush1.bf16.msra.mxu1 %v1777_v8 }
  0x2a   :  { %558 = vmatmul.mubr.bf16.gmra.mxu0 %v1748_v43  ;;  %1089 = vmatprep.subr.bf16.mxu1 %v1840_v5 }
  0x2b   :  { %1662 = vmatpush3.bf16.msra.mxu0 %v1747_v42  ;;  %565 = vmatprep.mubr.bf16.mxu0 %v1492_v50 }
  0x2c   :  { %614 = vmatmul.mubr.bf16.gmra.mxu1 %v1751_v45  ;;  %1663 = vmatprep.subr.bf16.mxu0 %v1752_v46 }
  0x2d   :  { %621 = vmatprep.mubr.bf16.mxu1 %v1494_v54  ;;  %1090 = vmatpush1.bf16.msra.mxu1 %v1778_v11 }
  0x2e   :  { %1091 = vmatprep.subr.bf16.mxu1 %v1840_v5 }
  0x2f   :  { %1664 = vmatpush3.bf16.msra.mxu0 %v1753_v47 }
  0x30   :  { %1665 = vmatprep.subr.bf16.mxu0 %v1754_v49 }
  0x31   :  { %1092 = vmatpush1.bf16.msra.mxu1 %v1779_v18 }
  0x32   :  { %566 = vmatmul.mubr.bf16.gmra.mxu0 %v1491_v51  ;;  %1093 = vmatprep.subr.bf16.mxu1 %v1840_v5 }
  0x33   :  { %1666 = vmatpush3.bf16.msra.mxu0 %v1756_v53  ;;  %661 = vmatprep.mubr.bf16.mxu0 %v1768_v59 }
  0x34   :  { %622 = vmatmul.mubr.bf16.gmra.mxu1 %v1493_v55  ;;  %1667 = vmatprep.subr.bf16.mxu0 %v1758_v56 }
  0x35   :  { %1094 = vmatpush1.bf16.msra.mxu1 %v1780_v23 }
  0x36   :  { %1095 = vmatprep.subr.bf16.mxu1 %v1840_v5 }
  0x37   :  { %1668 = vmatpush3.bf16.msra.mxu0 %v1759_v57 }
  0x38   :  { %1669 = vmatprep.subr.bf16.mxu0 %v1762_v58 }
  0x3b   :  { %1670 = vmatpush3.bf16.msra.mxu0 %v1763_v60 }
  0x3c   :  { %1671 = vmatprep.subr.bf16.mxu0 %v1764_v61 }
  0x3f   :  { %1672 = vmatpush3.bf16.msra.mxu0 %v1765_v62 }
  0x42   :  { %662 = vmatmul.mubr.bf16.vlgmr.msra.gmra.mxu0 %v1766_v63 }
  0x43   :  { %669 = vmatprep.mubr.bf16.mxu0 %v1769_v0 }
  0x4a   :  { %670 = vmatmul.mubr.bf16.gmra.mxu0 %v1771_v2 }
  0x4b   :  { %677 = vmatprep.mubr.bf16.mxu0 %v1496_v3 }
  0x52   :  { %678 = vmatmul.mubr.bf16.gmra.mxu0 %v1495_v4 }
  0x53   :  { %1293 = vmatprep.mubr.bf16.mxu0 %v1840_v5 }
  0xe2   :  { %v1605_v7 = vpop.f32.mrf.mxu0 }
  0xe4   :  { %v1606_v9 = vpop.f32.mrf.mxu0  ;;  %v1639_v10 = vpop.f32.mrf.mxu1 }
  0xe5   :  { %v1607_v35 = vadd.f32 %v1606_v9, %v1605_v7 }
  0xe6   :  { %v1608_v12 = vpop.f32.mrf.mxu0  ;;  %v1640_v13 = vpop.f32.mrf.mxu1 }
  0xe7   :  { %v552_v38 = vadd.f32 %v1607_v35, %v1478_v36  ;;  %v1641_v39 = vadd.f32 %v1640_v13, %v1639_v10 }
  0xe8   :  { %v1609_v14 = vpop.f32.mrf.mxu0  ;;  %v1642_v15 = vpop.f32.mrf.mxu1 }
  0xe9   :  { %v1610_v37 = vadd.f32 %v1609_v14, %v1608_v12  ;;  %v608_v44 = vadd.f32 %v1641_v39, %v552_v38 }
  0xea   :  { %v1611_v16 = vpop.f32.mrf.mxu0  ;;  %v1643_v17 = vpop.f32.mrf.mxu1 }
  0xeb   :  { %v555_v41 = vadd.f32 %v1610_v37, %v1478_v36  ;;  %v1644_v42 = vadd.f32 %v1643_v17, %v1642_v15 }
  0xec   :  { %v1612_v19 = vpop.f32.mrf.mxu0  ;;  %v1645_v20 = vpop.f32.mrf.mxu1 }
  0xed   :  { %v1613_v45 = vadd.f32 %v1612_v19, %v1611_v16  ;;  %v611_v49 = vadd.f32 %v1644_v42, %v555_v41  ;;  %v1782_v41 = vld [vmem:[%s2441_s3 + $0x8] sm:$0xff]  }
  0xee   :  { %v1614_v21 = vpop.f32.mrf.mxu0  ;;  %v1646_v22 = vpop.f32.mrf.mxu1 }
  0xef   :  { %v560_v52 = vadd.f32 %v1613_v45, %v1478_v36  ;;  %v1647_v53 = vadd.f32 %v1646_v22, %v1645_v20 }
  0xf0   :  { %v1615_v24 = vpop.f32.mrf.mxu0  ;;  %v1648_v25 = vpop.f32.mrf.mxu1 }
  0xf1   :  { %v1616_v50 = vadd.f32 %v1615_v24, %v1614_v21  ;;  %v616_v63 = vadd.f32 %v1647_v53, %v560_v52 }
  0xf2   :  { %v1617_v26 = vpop.f32.mrf.mxu0  ;;  %v1649_v27 = vpop.f32.mrf.mxu1 }
  0xf3   :  { %v563_v59 = vadd.f32 %v1616_v50, %v1478_v36  ;;  %v1650_v60 = vadd.f32 %v1649_v27, %v1648_v25 }
  0xf4   :  { %v1618_v28 = vpop.f32.mrf.mxu0  ;;  %v1651_v29 = vpop.f32.mrf.mxu1 }
  0xf5   :  { %v1619_v61 = vadd.f32 %v1618_v28, %v1617_v26  ;;  %v619_v6 = vadd.f32 %v1650_v60, %v563_v59 }
  0xf6   :  { %v1620_v30 = vpop.f32.mrf.mxu0  ;;  %v1652_v31 = vpop.f32.mrf.mxu1 }
  0xf7   :  { %v568_v7 = vadd.f32 %v1619_v61, %v1478_v36  ;;  %v1653_v9 = vadd.f32 %v1652_v31, %v1651_v29 }
  0xf8   :  { %v1621_v32 = vpop.f32.mrf.mxu0  ;;  %v1654_v33 = vpop.f32.mrf.mxu1 }
  0xf9   :  { %v624_v16 = vadd.f32 %v1653_v9, %v568_v7  ;;  %v1781_v33 = vld [vmem:[%s2441_s3 + $0x10] sm:$0xff]  }
  0xfa   :  { %v1655_v34 = vpop.f32.mrf.mxu1  ;;  %1096 = vmatpush1.bf16.msra.mxu1 %v1781_v33 }
  0xfb   :  { %1097 = vmatprep.subr.bf16.mxu1 %v1840_v5 }
  0xfe   :  { %1098 = vmatpush1.bf16.msra.mxu1 %v1782_v41 }
  0xff   :  { %1099 = vmatprep.subr.bf16.mxu1 %v1840_v5 }
 0x102   :  { %v1673_v40 = vpop.f32.mrf.mxu0 }
 0x104   :  { %v1674_v43 = vpop.f32.mrf.mxu0 }
 0x105   :  { %v1675_v46 = vadd.f32 %v1674_v43, %v1673_v40 }
 0x106   :  { %v1676_v47 = vpop.f32.mrf.mxu0 }
 0x107   :  { %v664_v48 = vadd.f32 %v1675_v46, %v608_v44 }
 0x108   :  { %v1677_v51 = vpop.f32.mrf.mxu0 }
 0x109   :  { %v1545_v54 = vmul.f32 -1.702, %v664_v48  ;;  %v1678_v55 = vadd.f32 %v1677_v51, %v1676_v47 }
 0x10a   :  { %v1679_v56 = vpop.f32.mrf.mxu0 }
 0x10b   :  { %v695_v57 = vmul.f32 1.442695, %v1545_v54  ;;  %v667_v58 = vadd.f32 %v1678_v55, %v611_v49  ;;  %v1783_v49 = vld [vmem:[%s2441_s3] sm:$0xff]  }
 0x10c   :  { %v1680_v62 = vpop.f32.mrf.mxu0  ;;  %1100 = vmatpush1.bf16.msra.mxu1 %v1783_v49 }
 0x10d   :  { %1800 = vpow2.f32 %v695_v57  ;;  %v1546_v0 = vmul.f32 -1.702, %v667_v58  ;;  %v1681_v1 = vadd.f32 %v1680_v62, %v1679_v56  ;;  %1115 = vmatprep.subr.bf16.mxu1 %v1840_v5 }
 0x10e   :  { %v1682_v2 = vpop.f32.mrf.mxu0 }
 0x10f   :  { %v697_v3 = vmul.f32 1.442695, %v1546_v0  ;;  %v2108_v4 = vadd.f32 %v1681_v1, %v616_v63 }
 0x110   :  { %v1683_v8 = vpop.f32.mrf.mxu0 }
 0x111   :  { %1802 = vpow2.f32 %v697_v3  ;;  %v1547_v10 = vmul.f32 -1.702, %v2108_v4  ;;  %v1684_v11 = vadd.f32 %v1683_v8, %v1682_v2  ;;  %v1774_v3 = vld [vmem:[%s2440_s7 + $0x4] ss:$8 sps:$4 sm:$0xff]  }
 0x112   :  { %v1685_v12 = vpop.f32.mrf.mxu0 }
 0x113   :  { %v699_v13 = vmul.f32 1.442695, %v1547_v10  ;;  %v2111_v14 = vadd.f32 %v1684_v11, %v619_v6  ;;  %v1785_v6 = vld [vmem:[%s2441_s3 + $0x40] sm:$0xff]   ;;  %s1844_s3 = smov 32  }
 0x114   :  { %v1686_v15 = vpop.f32.mrf.mxu0  ;;  %1116 = vmatpush2.bf16.msra.mxu1 %v1785_v6 }
 0x115   :  { %1804 = vpow2.f32 %v699_v13  ;;  %v1548_v17 = vmul.f32 -1.702, %v2111_v14  ;;  %v1687_v18 = vadd.f32 %v1686_v15, %v1685_v12 }
 0x116   :  { %v1688_v19 = vpop.f32.mrf.mxu0 }
 0x117   :  { %v701_v20 = vmul.f32 1.442695, %v1548_v17  ;;  %v2114_v21 = vadd.f32 %v1687_v18, %v624_v16 }
 0x118   :  { %v1689_v22 = vpop.f32.mrf.mxu0 }
 0x119   :  { %1806 = vpow2.f32 %v701_v20  ;;  %v1549_v23 = vmul.f32 -1.702, %v2114_v21 }
 0x11a   :  { %v1801_v24 = vpop.eup %1800 }
 0x11b   :  { %v705_v25 = vadd.f32 1.0, %v1801_v24  ;;  %v703_v26 = vmul.f32 1.442695, %v1549_v23 }
 0x11d   :  { %1808 = vrcp.f32 %v705_v25 }
 0x11e   :  { %v1803_v27 = vpop.eup %1802  ;;  %1810 = vpow2.f32 %v703_v26 }
 0x11f   :  { %v706_v28 = vadd.f32 1.0, %v1803_v27 }
 0x121   :  { %1812 = vrcp.f32 %v706_v28 }
 0x122   :  { %v1805_v29 = vpop.eup %1804 }
 0x123   :  { %v707_v30 = vadd.f32 1.0, %v1805_v29 }
 0x125   :  { %1814 = vrcp.f32 %v707_v30 }
 0x126   :  { %v1807_v31 = vpop.eup %1806 }
 0x127   :  { %v708_v32 = vadd.f32 1.0, %v1807_v31 }
 0x129   :  { %1816 = vrcp.f32 %v708_v32 }
 0x12a   :  { %v1809_v34 = vpop.eup %1808 }
 0x12b   :  { %v1811_v35 = vpop.eup %1810  ;;  %v2120_v36 = vmul.f32 %v1809_v34, %v664_v48 }
 0x12c   :  { %v709_v37 = vadd.f32 1.0, %v1811_v35 }
 0x12d   :  { %v730_v38 = vrot.slane %v2120_v36, 3  ;;  %v747_v40 = vrot.slane %v2120_v36, 4  ;;  %v782_v43 = vrot.slane %v2120_v36, 7  ;;  %v764_v52 = vrot.slane %v2120_v36, 5 }
 0x12e   :  { %v1813_v39 = vpop.eup %1812  ;;  %1818 = vrcp.f32 %v709_v37  ;;  %v804_v15 = vrot.slane %v2120_v36, 1 }
 0x12f   :  { %v2128_v42 = vmul.f32 %v1813_v39, %v667_v58  ;;  %v2132_v44 = vsel %vm729_vm0, 0.0, %v730_v38  ;;  %v759_v51 = vsel %vm746_vm1, 0.0, %v747_v40  ;;  %v796_v57 = vsel %vm781_vm2, 0.0, %v782_v43 }
 0x130   :  { %v776_v2 = vsel %vm763_vm3, 0.0, %v764_v52 }
 0x131   :  { %v800_v45 = vpack.c.bf16 %v2128_v42, %v2120_v36  ;;  %v748_v46 = vrot.slane %v2128_v42, 4  ;;  %v783_v47 = vrot.slane %v2128_v42, 7  ;;  %v765_v48 = vrot.slane %v2128_v42, 5 }
 0x132   :  { %v1815_v50 = vpop.eup %1814  ;;  %v731_v53 = vrot.slane %v2128_v42, 3  ;;  %v805_v10 = vrot.slane %v2128_v42, 1 }
 0x133   :  { %v2147_v54 = vmul.f32 %v1815_v50, %v2108_v4  ;;  %872 = vrot.lane.b32.xlu1 %v800_v45, %s1841_s14  ;;  %v2151_v55 = vsel %vm746_vm1, %v747_v40, %v748_v46  ;;  %v784_v56 = vsel %vm781_vm2, %v782_v43, %v783_v47  ;;  %v766_v61 = vsel %vm763_vm3, %v764_v52, %v765_v48 }
 0x134   :  { %v760_v58 = vpack.c.bf16 %v2151_v55, %v759_v51  ;;  %v797_v59 = vpack.c.bf16 %v784_v56, %v796_v57  ;;  %v2159_v60 = vsel %vm729_vm0, %v730_v38, %v731_v53  ;;  %v777_v11 = vpack.c.bf16 %v766_v61, %v776_v2 }
 0x135   :  { %v767_v62 = vrot.slane %v2147_v54, 5  ;;  %v733_v63 = vrot.slane %v2147_v54, 3  ;;  %v743_v0 = vpack.c.bf16 %v2159_v60, %v2132_v44  ;;  %v807_v4 = vrot.slane %v2147_v54, 1  ;;  %v1784_v44 = vld [vmem:[%s2440_s7] ss:$8 sps:$4 sm:$0xff]  }
 0x136   :  { %v1817_v1 = vpop.eup %1816  ;;  %845 = vrot.lane.b32.xlu0 %v760_v58, %s1842_s15  ;;  %v806_v22 = vsel %vm803_vm4, %v804_v15, %v805_v10  ;;  %v785_v32 = vrot.slane %v2147_v54, 7  ;;  %v1848_v2 = vmov 0.0|0.0  }
 0x137   :  { %v2177_v7 = vmul.f32 %v1817_v1, %v2111_v14  ;;  %863 = vrot.lane.b32.xlu1 %v797_v59, %s1843_s20  ;;  %v2181_v8 = vsel %vm763_vm3, %v765_v48, %v767_v62  ;;  %v2184_v9 = vsel %vm729_vm0, %v731_v53, %v733_v63  ;;  %v750_v14 = vrot.slane %v2147_v54, 4 }
 0x138   :  { %v840_v12 = vpack.c.bf16 %v2181_v8, %v766_v61  ;;  %v826_v13 = vpack.c.bf16 %v2184_v9, %v2159_v60  ;;  %v808_v16 = vsel %vm803_vm4, %v805_v10, %v807_v4  ;;  %v786_v45 = vsel %vm781_vm2, %v783_v47, %v785_v32  ;;  %v1786_v60 = vld [vmem:[%s2440_s7 + $0x14] ss:$8 sps:$4 sm:$0xff]  }
 0x139   :  { %v769_v17 = vrot.slane %v2177_v7, 5  ;;  %v752_v19 = vrot.slane %v2177_v7, 4  ;;  %v819_v24 = vpack.c.bf16 %v808_v16, %v806_v22  ;;  %v751_v25 = vsel %vm746_vm1, %v748_v46, %v750_v14 }
 0x13a   :  { %854 = vrot.lane.b32.xlu0 %v777_v11, %s1844_s3  ;;  %v992_v18 = vmul.bf16 %v1774_v3, %v840_v12  ;;  %v2204_v27 = vrot.slane %v2177_v7, 3  ;;  %v787_v29 = vrot.slane %v2177_v7, 7  ;;  %v834_v31 = vpack.c.bf16 %v751_v25, %v2151_v55 }
 0x13b   :  { %v1819_v20 = vpop.eup %1818  ;;  %890 = vrot.lane.b32.xlu1 %v826_v13, %s1845_s1  ;;  %v779_v26 = vpack.c.bf16 %v769_v17, %v769_v17  ;;  %v753_v28 = vsel %vm746_vm1, %v750_v14, %v752_v19  ;;  %v2220_v36 = vsel %vm763_vm3, %v767_v62, %v769_v17  ;;  %v801_v43 = vpack.c.bf16 %v2177_v7, %v2147_v54 }
 0x13c   :  { %v724_v23 = vmul.f32 %v1819_v20, %v2114_v21  ;;  %1566 = vmatprep.mubr.msk.bf16.mxu1 %vm904_vm5, %v992_v18  ;;  %v2212_v21 = vsel %vm729_vm0, %v733_v63, %v2204_v27  ;;  %v761_v35 = vpack.c.bf16 %v753_v28, %v751_v25  ;;  %v788_v38 = vsel %vm781_vm2, %v785_v32, %v787_v29 }
 0x13d   :  { %v744_v34 = vpack.c.bf16 %v2212_v21, %v2184_v9  ;;  %v809_v46 = vrot.slane %v2177_v7, 1  ;;  %v798_v48 = vpack.c.bf16 %v788_v38, %v786_v45  ;;  %v762_v52 = vpack.c.bf16 %v752_v19, %v752_v19 }
 0x13e   :  { %881 = vrot.lane.b32.xlu0 %v819_v24, %s1846_s21  ;;  %v836_v30 = vrot.slane %v724_v23, 5  ;;  %v811_v39 = vrot.slane %v724_v23, 1  ;;  %v829_v41 = vrot.slane %v724_v23, 4  ;;  %v822_v50 = vrot.slane %v724_v23, 3 }
 0x13f   :  { %858 = vrot.lane.b32.xlu1 %v779_v26, %s1844_s3  ;;  %v810_v42 = vsel %vm803_vm4, %v807_v4, %v809_v46  ;;  %v778_v56 = vpack.c.bf16 %v2220_v36, %v2181_v8  ;;  %v789_v59 = vrot.slane %v724_v23, 7  ;;  %v802_v61 = vpack.c.bf16 %v724_v23, %v724_v23 }
 0x140   :  { %v837_v33 = vsel %vm763_vm3, %v769_v17, %v836_v30  ;;  %v812_v49 = vsel %vm803_vm4, %v809_v46, %v811_v39  ;;  %v830_v51 = vsel %vm746_vm1, %v752_v19, %v829_v41  ;;  %v823_v55 = vsel %vm729_vm0, %v2204_v27, %v822_v50 }
 0x141   :  { %v2223_v37 = vsel %vm729_vm0, %v837_v33, 0.0  ;;  %v820_v53 = vpack.c.bf16 %v812_v49, %v810_v42  ;;  %v833_v47 = vsel %vm832_vm6, %v830_v51, 0.0  ;;  %v825_v58 = vsel %vm803_vm4, %v823_v55, 0.0 }
 0x142   :  { %898 = vrot.lane.b32.xlu0 %v834_v31, %s1847_s22  ;;  %v841_v40 = vpack.c.bf16 %v2223_v37, %v2220_v36  ;;  %v835_v57 = vpack.c.bf16 %v833_v47, %v753_v28  ;;  %v827_v54 = vpack.c.bf16 %v825_v58, %v2212_v21  ;;  %v790_v62 = vsel %vm781_vm2, %v787_v29, %v789_v59  ;;  %v963_v29 = vld [vmem:[%s2440_s7 + $0x20] sm:$0x11] }
 0x143   :  { %847 = vrot.lane.b32.xlu1 %v761_v35, %s1842_s15  ;;  %v799_v63 = vpack.c.bf16 %v790_v62, %v790_v62  ;;  %v818_v1 = vsel %vm781_vm2, %v811_v39, 0.0  ;;  %v1555_v35 = vcombine.high %v963_v29, %v963_v29  ;;  %v745_v36 = vpack.c.bf16 %v2204_v27, %v2204_v27  ;;  %v1788_v39 = vld [vmem:[%s2440_s7 + $0x10] ss:$8 sps:$4 sm:$0xff]   ;;  %v1793_v58 = vld [vmem:[%s2443_s5 + $0x4] ss:$24 sps:$4 sm:$0xff]  }
 0x144   :  { %v821_v3 = vpack.c.bf16 %v818_v1, %v818_v1  ;;  %v994_v23 = vmul.bf16 %v1786_v60, %v841_v40  ;;  %v1791_v59 = vld [vmem:[%s2443_s5] ss:$24 sps:$4 sm:$0xff]   ;;  %1275 = vmatprep.subr.bf16.mxu0 %v1793_v58  ;;  %1691 = vmatprep.subr.bf16.mxu1 %v1793_v58 }
 0x145   :  { %1276 = vmatpush1.bf16.msra.mxu0 %v1791_v59  ;;  %v1556_v62 = vld [vmem:[%s2444_s4] ss:$0 sm:$0xff] }
 0x146   :  { %874 = vrot.lane.b32.xlu0 %v801_v43, %s1841_s14  ;;  %v996_v43 = vmul.bf16 0.0|0.0, %v1555_v35 }
 0x147   :  { %865 = vrot.lane.b32.xlu1 %v798_v48, %s1843_s20 }
 0x14a   :  { %849 = vrot.lane.b32.xlu0 %v762_v52, %s1842_s15 }
 0x14b   :  { %883 = vrot.lane.b32.xlu1 %v820_v53, %s1846_s21  ;;  %v1554_v53 = vcombine.low %v963_v29, %v963_v29 }
 0x14e   :  { %856 = vrot.lane.b32.xlu0 %v778_v56, %s1844_s3 }
 0x14f   :  { %900 = vrot.lane.b32.xlu1 %v835_v57, %s1847_s22 }
 0x152   :  { %892 = vrot.lane.b32.xlu0 %v827_v54, %s1845_s1  ;;  %v1796_v54 = vld [vmem:[%s2443_s5 + $0x14] ss:$24 sps:$4 sm:$0xff]  }
 0x153   :  { %876 = vrot.lane.b32.xlu1 %v802_v61, %s1841_s14  ;;  %v1799_v61 = vld [vmem:[%s2443_s5 + $0xc] ss:$24 sps:$4 sm:$0xff]   ;;  %1397 = vmatprep.subr.bf16.mxu0 %v1796_v54 }
 0x156   :  { %867 = vrot.lane.b32.xlu0 %v799_v63, %s1843_s20 }
 0x157   :  { %894 = vrot.lane.b32.xlu1 %v1848_v2, %s1845_s1 }
 0x15a   :  { %885 = vrot.lane.b32.xlu0 %v821_v3, %s1846_s21 }
 0x15e   :  { %902 = vrot.lane.b32.xlu0 %v1848_v2, %s1847_s22 }
 0x1a5   :  { %v873_v4 = vpop.permute.xlu1 %872 }
 0x1a8   :  { %v846_v6 = vpop.permute.xlu0 %845 }
 0x1a9   :  { %v864_v7 = vpop.permute.xlu1 %863  ;;  %v907_v8 = vsel %vm904_vm5, %v743_v0, %v846_v6 }
 0x1ac   :  { %v855_v10 = vpop.permute.xlu0 %854 }
 0x1ad   :  { %v916_v11 = vsel %vm914_vm7, %v907_v8, %v855_v10  ;;  %v891_v12 = vpop.permute.xlu1 %890 }
 0x1ae   :  { %v923_v13 = vsel %vm921_vm8, %v916_v11, %v864_v7 }
 0x1af   :  { %v930_v14 = vsel %vm928_vm9, %v923_v13, %v873_v4 }
 0x1b0   :  { %v882_v15 = vpop.permute.xlu0 %881 }
 0x1b1   :  { %v937_v16 = vsel %vm935_vm10, %v930_v14, %v882_v15  ;;  %v859_v17 = vpop.permute.xlu1 %858 }
 0x1b2   :  { %v944_v18 = vsel %vm942_vm11, %v937_v16, %v891_v12 }
 0x1b4   :  { %v899_v0 = vpop.permute.xlu0 %898 }
 0x1b5   :  { %v951_v19 = vsel %vm949_vm12, %v944_v18, %v899_v0  ;;  %v848_v20 = vpop.permute.xlu1 %847 }
 0x1b6   :  { %v991_v22 = vmul.bf16 %v1784_v44, %v951_v19  ;;  %v910_v30 = vsel %vm904_vm5, %v744_v34, %v848_v20 }
 0x1b8   :  { %v875_v24 = vpop.permute.xlu0 %874  ;;  %1118 = vmatmul.mubr.bf16.vlgmr.msra.gmra.mxu1 %v991_v22 }
 0x1b9   :  { %v866_v25 = vpop.permute.xlu1 %865  ;;  %1567 = vmatprep.mubr.msk.bf16.mxu1 %vm904_vm5, %v994_v23  ;;  %1692 = vmatpush1.bf16.msra.mxu1 %v1791_v59 }
 0x1ba   :  { %1336 = vmatprep.subr.bf16.mxu1 %v1799_v61 }
 0x1bc   :  { %v850_v26 = vpop.permute.xlu0 %849 }
 0x1bd   :  { %v884_v28 = vpop.permute.xlu1 %883  ;;  %v913_v21 = vsel %vm904_vm5, %v745_v36, %v850_v26 }
 0x1be   :  { %v920_v27 = vsel %vm914_vm7, %v913_v21, %v859_v17 }
 0x1c0   :  { %v857_v31 = vpop.permute.xlu0 %856 }
 0x1c1   :  { %v918_v32 = vsel %vm914_vm7, %v910_v30, %v857_v31  ;;  %v901_v37 = vpop.permute.xlu1 %900 }
 0x1c2   :  { %v925_v33 = vsel %vm921_vm8, %v918_v32, %v866_v25 }
 0x1c3   :  { %v932_v38 = vsel %vm928_vm9, %v925_v33, %v875_v24 }
 0x1c4   :  { %v893_v40 = vpop.permute.xlu0 %892  ;;  %v939_v9 = vsel %vm935_vm10, %v932_v38, %v884_v28 }
 0x1c5   :  { %v946_v34 = vsel %vm942_vm11, %v939_v9, %v893_v40  ;;  %v877_v48 = vpop.permute.xlu1 %876  ;;  %v1794_v9 = vld [vmem:[%s2443_s5 + $0x10] ss:$24 sps:$4 sm:$0xff]  }
 0x1c6   :  { %v954_v41 = vsel %vm949_vm12, %v946_v34, %v901_v37 }
 0x1c7   :  { %v993_v45 = vmul.bf16 %v1788_v39, %v954_v41 }
 0x1c8   :  { %v868_v46 = vpop.permute.xlu0 %867 }
 0x1c9   :  { %v927_v49 = vsel %vm921_vm8, %v920_v27, %v868_v46  ;;  %1126 = vmatmul.mubr.bf16.gmra.mxu1 %v993_v45  ;;  %v895_v42 = vpop.permute.xlu1 %894 }
 0x1ca   :  { %1568 = vmatprep.mubr.msk.bf16.mxu1 %vm904_vm5, %v996_v43  ;;  %v934_v51 = vsel %vm928_vm9, %v927_v49, %v877_v48 }
 0x1cc   :  { %v886_v50 = vpop.permute.xlu0 %885 }
 0x1cd   :  { %v941_v52 = vsel %vm935_vm10, %v934_v51, %v886_v50  ;;  %v1797_v51 = vld [vmem:[%s2443_s5 + $0x8] ss:$24 sps:$4 sm:$0xff]  }
 0x1ce   :  { %v948_v47 = vsel %vm942_vm11, %v941_v52, %v895_v42  ;;  %v1192_v42 = vlaneseq }
 0x1d0   :  { %v903_v55 = vpop.permute.xlu0 %902 }
 0x1d1   :  { %v957_v56 = vsel %vm949_vm12, %v948_v47, %v903_v55  ;;  %v1190_v55 = vld [vmem:[%s2445_s6] sm:$0x3f] }
 0x1d2   :  { %v995_v57 = vmul.bf16 %v1554_v53, %v957_v56  ;;  %v1193_v53 = vshrl.u32 %v1192_v42, 7 }
 0x1d4   :  { %1134 = vmatmul.mubr.bf16.gmra.mxu1 %v995_v57  ;;  %v1194_v47 = vsub.s32 0, %v1193_v53  ;;  %v1198_v56 = vsub.s32 1, %v1193_v53 }
 0x1d5   :  { %1313 = vmatprep.mubr.bf16.mxu1 %v1840_v5 }
 0x1d6   :  { %v1195_v57 = vrot.slane %v1190_v55, %v1194_v47  ;;  %v1199_v58 = vrot.slane %v1190_v55, %v1198_v56 }
 0x278   :  { %v1119_v63 = vpop.f32.mrf.mxu1 }
 0x279   :  { %v1120_v1 = vadd.f32 %v1556_v62, %v1119_v63 }
 0x27a   :  { %v1121_v2 = vpop.f32.mrf.mxu1 }
 0x27b   :  { %v1569_v3 = vmul.f32 -1.702, %v1120_v1 }
 0x27c   :  { %v1122_v4 = vpop.f32.mrf.mxu1 }
 0x27d   :  { %v1151_v6 = vmul.f32 1.442695, %v1569_v3  ;;  %v1123_v7 = vadd.f32 %v1556_v62, %v1122_v4 }
 0x27e   :  { %v1124_v8 = vpop.f32.mrf.mxu1 }
 0x27f   :  { %1820 = vpow2.f32 %v1151_v6  ;;  %v1570_v10 = vmul.f32 -1.702, %v1123_v7  ;;  %v1210_v6 = vsub.s32 4, %v1193_v53 }
 0x281   :  { %v1153_v11 = vmul.f32 1.442695, %v1570_v10  ;;  %v1214_v10 = vsub.s32 5, %v1193_v53 }
 0x283   :  { %1822 = vpow2.f32 %v1153_v11 }
 0x289   :  { %v1127_v12 = vpop.f32.mrf.mxu1 }
 0x28a   :  { %v1128_v13 = vadd.f32 %v1556_v62, %v1127_v12 }
 0x28b   :  { %v1129_v14 = vpop.f32.mrf.mxu1 }
 0x28c   :  { %v1821_v15 = vpop.eup %1820  ;;  %v1571_v16 = vmul.f32 -1.702, %v1128_v13 }
 0x28d   :  { %v1161_v17 = vadd.f32 1.0, %v1821_v15  ;;  %v1130_v44 = vpop.f32.mrf.mxu1 }
 0x28e   :  { %v1155_v60 = vmul.f32 1.442695, %v1571_v16  ;;  %v1131_v0 = vadd.f32 %v1556_v62, %v1130_v44 }
 0x28f   :  { %v1132_v18 = vpop.f32.mrf.mxu1 }
 0x290   :  { %v1823_v19 = vpop.eup %1822  ;;  %1824 = vpow2.f32 %v1155_v60  ;;  %v1572_v20 = vmul.f32 -1.702, %v1131_v0 }
 0x291   :  { %1826 = vrcp.f32 %v1161_v17  ;;  %v1162_v22 = vadd.f32 1.0, %v1823_v19  ;;  %v1215_v17 = vrot.slane %v1190_v55, %v1214_v10 }
 0x292   :  { %v1157_v23 = vmul.f32 1.442695, %v1572_v20 }
 0x293   :  { %1828 = vrcp.f32 %v1162_v22 }
 0x294   :  { %1830 = vpow2.f32 %v1157_v23  ;;  %v1135_v24 = vpop.f32.mrf.mxu1  ;;  %v1206_v23 = vsub.s32 3, %v1193_v53 }
 0x295   :  { %v1136_v25 = vadd.f32 %v1556_v62, %v1135_v24 }
 0x296   :  { %v1137_v26 = vpop.f32.mrf.mxu1 }
 0x297   :  { %v1573_v28 = vmul.f32 -1.702, %v1136_v25 }
 0x298   :  { %v1138_v29 = vpop.f32.mrf.mxu1 }
 0x299   :  { %v1159_v30 = vmul.f32 1.442695, %v1573_v28 }
 0x29a   :  { %v1139_v31 = vpop.f32.mrf.mxu1 }
 0x29b   :  { %1832 = vpow2.f32 %v1159_v30 }
 0x29d   :  { %v1825_v32 = vpop.eup %1824 }
 0x29e   :  { %v1827_v33 = vpop.eup %1826  ;;  %v1163_v35 = vadd.f32 1.0, %v1825_v32  ;;  %v1207_v32 = vrot.slane %v1190_v55, %v1206_v23 }
 0x29f   :  { %v1176_v38 = vmul.f32 %v1827_v33, %v1120_v1 }
 0x2a0   :  { %v1829_v36 = vpop.eup %1828  ;;  %1834 = vrcp.f32 %v1163_v35 }
 0x2a1   :  { %v1831_v37 = vpop.eup %1830  ;;  %v1177_v39 = vmul.f32 %v1829_v36, %v1123_v7 }
 0x2a2   :  { %v1164_v40 = vadd.f32 1.0, %v1831_v37 }
 0x2a3   :  { %v1181_v21 = vpack.c.bf16 %v1177_v39, %v1176_v38 }
 0x2a4   :  { %1836 = vrcp.f32 %v1164_v40 }
 0x2a5   :  { %1580 = vmatmul.mubr.msk.bf16.vlgmr.msra.gmra.mxu0 %vm904_vm5, %v1181_v21 }
 0x2a6   :  { %1303 = vmatprep.mubr.bf16.mxu0 %v1840_v5  ;;  %1398 = vmatpush1.bf16.msra.mxu0 %v1794_v9 }
 0x2a8   :  { %v1833_v34 = vpop.eup %1832 }
 0x2a9   :  { %v1165_v41 = vadd.f32 1.0, %v1833_v34 }
 0x2ab   :  { %1838 = vrcp.f32 %v1165_v41 }
 0x2ad   :  { %v1835_v43 = vpop.eup %1834 }
 0x2ae   :  { %v1178_v46 = vmul.f32 %v1835_v43, %v1128_v13  ;;  %v1211_v13 = vrot.slane %v1190_v55, %v1210_v6 }
 0x2b1   :  { %v1837_v45 = vpop.eup %1836 }
 0x2b2   :  { %v1179_v27 = vmul.f32 %v1837_v45, %v1131_v0  ;;  %v1202_v0 = vsub.s32 2, %v1193_v53 }
 0x2b4   :  { %v1182_v48 = vpack.c.bf16 %v1179_v27, %v1178_v46  ;;  %v1203_v28 = vrot.slane %v1190_v55, %v1202_v0 }
 0x2b6   :  { %1581 = vmatmul.mubr.msk.bf16.gmra.mxu0 %vm904_vm5, %v1182_v48 }
 0x2b7   :  { %1415 = vmatprep.mubr.bf16.mxu0 %v1840_v5 }
 0x2b8   :  { %v1839_v49 = vpop.eup %1838 }
 0x2b9   :  { %v1180_v50 = vmul.f32 %v1839_v49, %v1136_v25 }
 0x2bb   :  { %v1183_v52 = vpack.c.bf16 %v1180_v50, %v1180_v50 }
 0x2bd   :  { %1582 = vmatmul.mubr.msk.bf16.vlgmr.msra.gmra.mxu1 %vm904_vm5, %v1183_v52 }
 0x2be   :  { %1337 = vmatpush1.bf16.msra.mxu1 %v1797_v51  ;;  %1586 = vmatmul.mubr.msk.bf16.vlgmr.msra.gmra.mxu0 %vm904_vm5, %v1181_v21 }
 0x2bf   :  { %1354 = vmatprep.mubr.bf16.mxu1 %v1840_v5  ;;  %1425 = vmatprep.mubr.bf16.mxu0 %v1840_v5 }
 0x2c5   :  { %1583 = vmatmul.mubr.msk.bf16.vlgmr.msra.gmra.mxu1 %vm904_vm5, %v1181_v21 }
 0x2c6   :  { %1587 = vmatmul.mubr.msk.bf16.gmra.mxu0 %vm904_vm5, %v1182_v48  ;;  %1364 = vmatprep.mubr.bf16.mxu1 %v1840_v5 }
 0x2c7   :  { %1435 = vmatprep.mubr.bf16.mxu0 %v1840_v5 }
 0x2cd   :  { %1584 = vmatmul.mubr.msk.bf16.gmra.mxu1 %vm904_vm5, %v1182_v48 }
 0x2ce   :  { %1588 = vmatmul.mubr.msk.bf16.gmra.mxu0 %vm904_vm5, %v1183_v52  ;;  %1374 = vmatprep.mubr.bf16.mxu1 %v1840_v5 }
 0x2d5   :  { %1585 = vmatmul.mubr.msk.bf16.gmra.mxu1 %vm904_vm5, %v1183_v52 }
 0x365   :  { %v1295_v59 = vpop.f32.mrf.mxu0 }
 0x366   :  { %v1296_v54 = vadd.f32 %v1295_v59, %v1195_v57 }
 0x367   :  { %v1297_v61 = vpop.f32.mrf.mxu0 }
 0x368   :  { %1444 = vst [vmem:[%s2446_s8] sm:$0xff] %v1296_v54  ;;  %v1298_v5 = vadd.f32 %v1297_v61, %v1199_v58 }
 0x369   :  { %v1299_v62 = vpop.f32.mrf.mxu0 }
 0x36a   :  { %1445 = vst [vmem:[%s2446_s8 + $0x8] sm:$0xff] %v1298_v5  ;;  %v1300_v63 = vadd.f32 %v1299_v62, %v1195_v57 }
 0x36b   :  { %v1301_v1 = vpop.f32.mrf.mxu0 }
 0x36c   :  { %1450 = vst [vmem:[%s2446_s8 + $0x30] sm:$0xff] %v1300_v63  ;;  %v1302_v2 = vadd.f32 %v1301_v1, %v1199_v58 }
 0x36e   :  { %1451 = vst [vmem:[%s2446_s8 + $0x38] sm:$0xff] %v1302_v2 }
 0x376   :  { %v1305_v3 = vpop.f32.mrf.mxu0 }
 0x377   :  { %v1306_v4 = vadd.f32 %v1305_v3, %v1195_v57 }
 0x378   :  { %v1307_v7 = vpop.f32.mrf.mxu0 }
 0x379   :  { %1456 = vst [vmem:[%s2446_s8 + $0x60] sm:$0xff] %v1306_v4  ;;  %v1308_v8 = vadd.f32 %v1307_v7, %v1199_v58 }
 0x37a   :  { %v1309_v11 = vpop.f32.mrf.mxu0 }
 0x37b   :  { %1457 = vst [vmem:[%s2446_s8 + $0x68] sm:$0xff] %v1308_v8  ;;  %v1310_v12 = vadd.f32 %v1309_v11, %v1195_v57 }
 0x37c   :  { %v1311_v14 = vpop.f32.mrf.mxu0 }
 0x37d   :  { %1462 = vst [vmem:[%s2446_s8 + $0x90] sm:$0xff] %v1310_v12  ;;  %v1312_v15 = vadd.f32 %v1311_v14, %v1199_v58  ;;  %v1315_v16 = vpop.f32.mrf.mxu1 }
 0x37e   :  { %v1316_v44 = vadd.f32 %v1315_v16, %v1195_v57  ;;  %v1417_v60 = vpop.f32.mrf.mxu0 }
 0x37f   :  { %1463 = vst [vmem:[%s2446_s8 + $0x98] sm:$0xff] %v1312_v15  ;;  %v1418_v18 = vadd.f32 %v1417_v60, %v1211_v13  ;;  %v1317_v19 = vpop.f32.mrf.mxu1 }
 0x380   :  { %1468 = vst [vmem:[%s2446_s8 + $0xc0] sm:$0x3] %v1316_v44  ;;  %v1318_v20 = vadd.f32 %v1317_v19, %v1199_v58  ;;  %v1419_v22 = vpop.f32.mrf.mxu0 }
 0x381   :  { %1448 = vst [vmem:[%s2446_s8 + $0x20] sm:$0xff] %v1418_v18  ;;  %v1420_v24 = vadd.f32 %v1419_v22, %v1215_v17  ;;  %v1319_v25 = vpop.f32.mrf.mxu1 }
 0x382   :  { %1469 = vst [vmem:[%s2446_s8 + $0xc8] sm:$0x3] %v1318_v20  ;;  %v1421_v26 = vpop.f32.mrf.mxu0 }
 0x383   :  { %1449 = vst [vmem:[%s2446_s8 + $0x28] sm:$0xff] %v1420_v24  ;;  %v1422_v29 = vadd.f32 %v1421_v26, %v1211_v13  ;;  %v1320_v30 = vpop.f32.mrf.mxu1 }
 0x384   :  { %v1423_v31 = vpop.f32.mrf.mxu0 }
 0x385   :  { %1454 = vst [vmem:[%s2446_s8 + $0x50] sm:$0xff] %v1422_v29  ;;  %v1424_v33 = vadd.f32 %v1423_v31, %v1215_v17  ;;  %v1356_v35 = vpop.f32.mrf.mxu1 }
 0x386   :  { %v1357_v36 = vadd.f32 %v1356_v35, %v1203_v28  ;;  %v1427_v37 = vpop.f32.mrf.mxu0 }
 0x387   :  { %1455 = vst [vmem:[%s2446_s8 + $0x58] sm:$0xff] %v1424_v33  ;;  %v1428_v38 = vadd.f32 %v1427_v37, %v1211_v13  ;;  %v1358_v39 = vpop.f32.mrf.mxu1 }
 0x388   :  { %1446 = vst [vmem:[%s2446_s8 + $0x10] sm:$0xff] %v1357_v36  ;;  %v1359_v40 = vadd.f32 %v1358_v39, %v1207_v32  ;;  %v1429_v9 = vpop.f32.mrf.mxu0 }
 0x389   :  { %1460 = vst [vmem:[%s2446_s8 + $0x80] sm:$0xff] %v1428_v38  ;;  %v1430_v21 = vadd.f32 %v1429_v9, %v1215_v17  ;;  %v1360_v34 = vpop.f32.mrf.mxu1 }
 0x38a   :  { %1447 = vst [vmem:[%s2446_s8 + $0x18] sm:$0xff] %v1359_v40  ;;  %v1361_v41 = vadd.f32 %v1360_v34, %v1203_v28  ;;  %v1431_v43 = vpop.f32.mrf.mxu0 }
 0x38b   :  { %1461 = vst [vmem:[%s2446_s8 + $0x88] sm:$0xff] %v1430_v21  ;;  %v1432_v45 = vadd.f32 %v1431_v43, %v1211_v13  ;;  %v1362_v46 = vpop.f32.mrf.mxu1 }
 0x38c   :  { %1452 = vst [vmem:[%s2446_s8 + $0x40] sm:$0xff] %v1361_v41  ;;  %v1363_v27 = vadd.f32 %v1362_v46, %v1207_v32  ;;  %v1433_v48 = vpop.f32.mrf.mxu0 }
 0x38d   :  { %1466 = vst [vmem:[%s2446_s8 + $0xb0] sm:$0xff] %v1432_v45  ;;  %v1434_v49 = vadd.f32 %v1433_v48, %v1215_v17  ;;  %v1366_v50 = vpop.f32.mrf.mxu1 }
 0x38e   :  { %1453 = vst [vmem:[%s2446_s8 + $0x48] sm:$0xff] %v1363_v27  ;;  %v1367_v51 = vadd.f32 %v1366_v50, %v1203_v28  ;;  %v1437_v52 = vpop.f32.mrf.mxu0 }
 0x38f   :  { %1467 = vst [vmem:[%s2446_s8 + $0xb8] sm:$0xff] %v1434_v49  ;;  %v1438_v42 = vadd.f32 %v1437_v52, %v1211_v13  ;;  %v1368_v53 = vpop.f32.mrf.mxu1 }
 0x390   :  { %1458 = vst [vmem:[%s2446_s8 + $0x70] sm:$0xff] %v1367_v51  ;;  %v1369_v47 = vadd.f32 %v1368_v53, %v1207_v32  ;;  %v1439_v55 = vpop.f32.mrf.mxu0 }
 0x391   :  { %1472 = vst [vmem:[%s2446_s8 + $0xe0] sm:$0x3] %v1438_v42  ;;  %v1440_v56 = vadd.f32 %v1439_v55, %v1215_v17  ;;  %v1370_v57 = vpop.f32.mrf.mxu1 }
 0x392   :  { %1459 = vst [vmem:[%s2446_s8 + $0x78] sm:$0xff] %v1369_v47  ;;  %v1371_v58 = vadd.f32 %v1370_v57, %v1203_v28  ;;  %v1441_v59 = vpop.f32.mrf.mxu0 }
 0x393   :  { %1473 = vst [vmem:[%s2446_s8 + $0xe8] sm:$0x3] %v1440_v56  ;;  %v1372_v54 = vpop.f32.mrf.mxu1 }
 0x394   :  { %1464 = vst [vmem:[%s2446_s8 + $0xa0] sm:$0xff] %v1371_v58  ;;  %v1373_v61 = vadd.f32 %v1372_v54, %v1207_v32  ;;  %v1442_v5 = vpop.f32.mrf.mxu0 }
 0x395   :  { %v1376_v62 = vpop.f32.mrf.mxu1 }
 0x396   :  { %1465 = vst [vmem:[%s2446_s8 + $0xa8] sm:$0xff] %v1373_v61  ;;  %v1377_v63 = vadd.f32 %v1376_v62, %v1203_v28 }
 0x397   :  { %v1378_v1 = vpop.f32.mrf.mxu1 }
 0x398   :  { %1470 = vst [vmem:[%s2446_s8 + $0xd0] sm:$0x3] %v1377_v63  ;;  %v1379_v2 = vadd.f32 %v1378_v1, %v1207_v32 }
 0x399   :  { %v1380_v3 = vpop.f32.mrf.mxu1 }
 0x39a   :  { %1471 = vst [vmem:[%s2446_s8 + $0xd8] sm:$0x3] %v1379_v2 }
 0x39b   :  { %v1381_v4 = vpop.f32.mrf.mxu1 }

</bundles_post_ra>
